<compile_context>
chip_gen: v6e
topology: v6e:2x2x1
jax: 0.10.0
libtpu: 0.0.40
codegen_flags: <defaults>
</compile_context>

<pallas_src>
import functools

import jax
import jax.numpy as jnp
from jax.experimental import pallas as pl
from jax.experimental.pallas import tpu as pltpu

_LANES = 128         # lane width (last dim)
_MAX_TILE_R = 1024   # max sublane rows per block: 1024*128*4B = 512 KiB (f32)


def _rmse_partial_kernel(x_ref, y_ref, o_ref, *, tile_r, tiles_per_split, rows):
    """Accumulate (x - y)^2 elementwise into the resident per-split output block.

    x_ref, y_ref : (tile_r, 128) input blocks (native dtype)
    o_ref        : (1, tile_r, 128) f32 resident accumulator block (one per split)
    """
    i = pl.program_id(1)

    @pl.when(i == 0)
    def _():
        o_ref[...] = jnp.zeros_like(o_ref)

    # Logical (unclamped) block index for this grid step.  The index_map clamps
    # the DMA source to stay in range; here we mask out rows that belong to
    # out-of-range or partial blocks so they contribute nothing to the sum.
    blk = pl.program_id(0) * tiles_per_split + i
    row0 = blk * tile_r
    r_iota = jax.lax.broadcasted_iota(jnp.int32, (tile_r, _LANES), 0)
    valid = (row0 + r_iota) < rows

    d = x_ref[...].astype(jnp.float32) - y_ref[...].astype(jnp.float32)
    d = jnp.where(valid, d, 0.0)
    o_ref[0] += d * d


def rmse_loss(x: jax.Array, y: jax.Array) -> jax.Array:
    """Pallas implementation of torch.sqrt(nn.MSELoss()(x, y)).

    Accepts any matching shapes / dtypes; returns a float32 scalar.
    """
    assert x.shape == y.shape, "x and y must have the same shape"
    n = x.size

    xf = jnp.ravel(x)
    yf = jnp.ravel(y)

    # Pad only to a lane multiple (128) when needed; padded zeros give diff=0
    # and contribute nothing.  Lane-aligned sizes (the common case) do no copy.
    rem = n % _LANES
    if rem:
        pad = _LANES - rem
        xf = jnp.pad(xf, (0, pad))
        yf = jnp.pad(yf, (0, pad))

    rows = xf.size // _LANES
    x2d = xf.reshape(rows, _LANES)
    y2d = yf.reshape(rows, _LANES)

    # Block rows: big streaming tile, or the full array if it is small.  Either
    # way the (8,128) BlockSpec constraint is satisfied (1024 % 8 == 0, or the
    # block equals the full array dims).
    tile_r = min(_MAX_TILE_R, rows)
    tiles_total = int(pl.cdiv(rows, tile_r))
    num_splits = 2 if tiles_total >= 2 else 1       # 2-TC sharding on v7x
    tiles_per_split = int(pl.cdiv(tiles_total, num_splits))

    def in_map(c, i):
        blk = c * tiles_per_split + i
        # Clamp so the DMA source block always stays in range; out-of-range
        # logical blocks are fully masked inside the kernel.
        return (jnp.minimum(blk, tiles_total - 1), 0)

    kernel = functools.partial(
        _rmse_partial_kernel,
        tile_r=tile_r,
        tiles_per_split=tiles_per_split,
        rows=rows,
    )

    bytes_in = 2 * n * x.dtype.itemsize
    bytes_out = num_splits * tile_r * _LANES * 4

    partials = pl.pallas_call(
        kernel,
        out_shape=jax.ShapeDtypeStruct((num_splits, tile_r, _LANES), jnp.float32),
        grid_spec=pltpu.PrefetchScalarGridSpec(
            num_scalar_prefetch=0,
            grid=(num_splits, tiles_per_split),
            in_specs=[
                pl.BlockSpec((tile_r, _LANES), in_map),
                pl.BlockSpec((tile_r, _LANES), in_map),
            ],
            out_specs=pl.BlockSpec((1, tile_r, _LANES), lambda c, i: (c, 0, 0)),
        ),
        compiler_params=pltpu.CompilerParams(
            dimension_semantics=("parallel", "arbitrary"),
        ),
        cost_estimate=pl.CostEstimate(
            flops=3 * n,
            transcendentals=0,
            bytes_accessed=bytes_in + bytes_out,
        ),
    )(x2d, y2d)

    # Tiny epilogue: one cross-lane reduce over the per-split partial-sum
    # blocks, divide by the true (unpadded) element count, sqrt.
    return jnp.sqrt(jnp.sum(partials) / n)


if __name__ == "__main__":
    key = jax.random.PRNGKey(0)
    kx, ky = jax.random.split(key)

    # Small NCHW-shaped inputs (RMSELoss is shape-agnostic; mirrors a conv output).
    B, C, H, W = 2, 4, 16, 16
    x = jax.random.normal(kx, (B, C, H, W), dtype=jnp.float32)
    y = jax.random.normal(ky, (B, C, H, W), dtype=jnp.float32)

    loss = rmse_loss(x, y)
    loss = jax.block_until_ready(loss)

    # Reference check in plain JAX.
    ref = jnp.sqrt(jnp.mean((x - y) ** 2))
    assert jnp.allclose(loss, ref, rtol=1e-5, atol=1e-6), (loss, ref)

    print("KERNEL_OK")
</pallas_src>

<mosaic_0001>
module attributes {stable_mosaic.version = 11 : i64} {
  func.func @_rmse_partial_kernel(%arg0: i32, %arg1: i32, %arg2: memref<16x128xf32, #tpu.memory_space<vmem>>, %arg3: memref<16x128xf32, #tpu.memory_space<vmem>>, %arg4: memref<1x16x128xf32, #tpu.memory_space<vmem>>) attributes {dimension_semantics = [#tpu.dimension_semantics<parallel>, #tpu.dimension_semantics<arbitrary>], iteration_bounds = array<i64: 1, 1>, scalar_prefetch = 0 : i64, scratch_operands = 0 : i64, tpu.core_type = #tpu.core_type<tc>, window_params = [{transform_indices = @transform_0, window_bounds = array<i64: 16, 128>}, {transform_indices = @transform_1, window_bounds = array<i64: 16, 128>}, {transform_indices = @transform_2, window_bounds = array<i64: 1, 16, 128>}]} {
    %c0_i32 = arith.constant 0 : i32
    %0 = arith.cmpi eq, %arg1, %c0_i32 : i32
    %1 = arith.extui %0 : i1 to i32
    %c0_i32_0 = arith.constant 0 : i32
    %2 = arith.cmpi ne, %1, %c0_i32_0 : i32
    scf.if %2 {
      %cst_11 = arith.constant 0.000000e+00 : f32
      %23 = vector.broadcast %cst_11 : f32 to vector<1x16x128xf32>
      %c0_12 = arith.constant 0 : index
      %c0_13 = arith.constant 0 : index
      %c0_14 = arith.constant 0 : index
      %24 = vector.load %arg4[%c0_12, %c0_13, %c0_14] : memref<1x16x128xf32, #tpu.memory_space<vmem>>, vector<1x16x128xf32>
      tpu.vector_store %arg4[%c0_12, %c0_13, %c0_14], %23 {strides = array<i32>} : memref<1x16x128xf32, #tpu.memory_space<vmem>>, vector<1x16x128xf32>,
    } else {
    }
    %c1_i32 = arith.constant 1 : i32
    %3 = arith.muli %arg0, %c1_i32 : i32
    %4 = arith.addi %3, %arg1 : i32
    %c16_i32 = arith.constant 16 : i32
    %5 = arith.muli %4, %c16_i32 : i32
    %6 = tpu.iota {dimensions = array<i32: 0>} : vector<16x128xi32>
    %7 = vector.broadcast %5 : i32 to vector<16x128xi32>
    %8 = arith.addi %7, %6 : vector<16x128xi32>
    %c16_i32_1 = arith.constant 16 : i32
    %9 = vector.broadcast %c16_i32_1 : i32 to vector<16x128xi32>
    %10 = arith.cmpi slt, %8, %9 : vector<16x128xi32>
    %c0 = arith.constant 0 : index
    %c0_2 = arith.constant 0 : index
    %11 = vector.load %arg2[%c0, %c0_2] : memref<16x128xf32, #tpu.memory_space<vmem>>, vector<16x128xf32>
    %c0_3 = arith.constant 0 : index
    %c0_4 = arith.constant 0 : index
    %12 = vector.load %arg3[%c0_3, %c0_4] : memref<16x128xf32, #tpu.memory_space<vmem>>, vector<16x128xf32>
    %13 = arith.subf %11, %12 : vector<16x128xf32>
    %cst = arith.constant 0.000000e+00 : f32
    %14 = vector.broadcast %cst : f32 to vector<16x128xf32>
    %15 = arith.select %10, %13, %14 : vector<16x128xi1>, vector<16x128xf32>
    %c0_5 = arith.constant 0 : index
    %c0_6 = arith.constant 0 : index
    %c0_7 = arith.constant 0 : index
    %16 = vector.load %arg4[%c0_5, %c0_6, %c0_7] : memref<1x16x128xf32, #tpu.memory_space<vmem>>, vector<1x16x128xf32>
    %17 = vector.shape_cast %16 : vector<1x16x128xf32> to vector<16x128xf32>
    %18 = arith.mulf %15, %15 : vector<16x128xf32>
    %19 = arith.addf %17, %18 : vector<16x128xf32>
    %c0_8 = arith.constant 0 : index
    %c0_9 = arith.constant 0 : index
    %c0_10 = arith.constant 0 : index
    %20 = vector.load %arg4[%c0_8, %c0_9, %c0_10] : memref<1x16x128xf32, #tpu.memory_space<vmem>>, vector<1x16x128xf32>
    %21 = vector.shape_cast %20 : vector<1x16x128xf32> to vector<16x128xf32>
    %22 = vector.shape_cast %19 : vector<16x128xf32> to vector<1x16x128xf32>
    tpu.vector_store %arg4[%c0_8, %c0_9, %c0_10], %22 {strides = array<i32>} : memref<1x16x128xf32, #tpu.memory_space<vmem>>, vector<1x16x128xf32>,
    return
  }
  func.func @transform_0(%arg0: i32, %arg1: i32) -> (i32, i32) {
    %c1_i32 = arith.constant 1 : i32
    %0 = arith.muli %arg0, %c1_i32 : i32
    %1 = arith.addi %0, %arg1 : i32
    %c0_i32 = arith.constant 0 : i32
    %2 = arith.minsi %1, %c0_i32 : i32
    %c0_i32_0 = arith.constant 0 : i32
    %c0_i32_1 = arith.constant 0 : i32
    return %2, %c0_i32_0 : i32, i32
  }
  func.func @transform_1(%arg0: i32, %arg1: i32) -> (i32, i32) {
    %c1_i32 = arith.constant 1 : i32
    %0 = arith.muli %arg0, %c1_i32 : i32
    %1 = arith.addi %0, %arg1 : i32
    %c0_i32 = arith.constant 0 : i32
    %2 = arith.minsi %1, %c0_i32 : i32
    %c0_i32_0 = arith.constant 0 : i32
    %c0_i32_1 = arith.constant 0 : i32
    return %2, %c0_i32_0 : i32, i32
  }
  func.func @transform_2(%arg0: i32, %arg1: i32) -> (i32, i32, i32) {
    %c0_i32 = arith.constant 0 : i32
    %c0_i32_0 = arith.constant 0 : i32
    %c0_i32_1 = arith.constant 0 : i32
    return %arg0, %c0_i32, %c0_i32_0 : i32, i32, i32
  }
}

</mosaic_0001>

<bundles_post_ra>
// kernel: tpu_custom_call.1
= control target key start
LH: loop header
LB: loop body
LE: loop exit
PB: predicated region body
PF: predicated region fallthrough
CT: control target
= control target key end

     0   :  { %7 = vsyncpa [#allocation3], 0  ;;  %s224_s0 = inlined_call_operand.hbm [shape: f32[16,128], index: 0, kind: input, shape index: {}]   ;;  %s225_s1 = inlined_call_operand.hbm [shape: f32[16,128], index: 1, kind: input, shape index: {}]   ;;  %s226_s2 = inlined_call_operand.hbm [shape: f32[1,16,128], index: 2, kind: output, shape index: {}]  }
   0x1   :  { %8 = vsyncpa [#allocation6], 0 }
   0x2   :  { %9 = vsyncpa [#allocation4], 0  ;;  %s186_s9 = smov [#allocation2]  }
   0x3   :  { %s21_s10 = sshll.u32 %s186_s9, 4  ;;  %s22_s10 = int_to_ptr.vmem [resolvable:$true] %s21_s10 }
   0x4   :  { %s128_s11 = scalar_lea.vmem %s22_s10, 256  ;;  %p133_p1 = scmp.lt.s32.totalorder %s22_s10, %s22_s10 }
   0x5   :  { %p129_p0 = scmp.ne.s32.totalorder %s22_s10, %s128_s11  ;;  %p134_p2 = scmp.lt.s32.totalorder %s128_s11, %s128_s11 }
   0x7   :  { %p135_p3 = por %p134_p2, %p133_p1 }
   0x9   :  { %p136_p4 = pnand %p135_p3, %p129_p0 }
   0xb   :  { %139 = shalt.err (!%p136_p4)
}
   0xc   :  { %s187_s12 = smov 128   ;;  %s188_s13 = smov 8  }
   0xd   :  { %27 = dma.hbm_to_vmem [thread:$0]  %s224_s0, 256, %s22_s10, [#allocation3], %s187_s12, %s187_s12, %s188_s13  }
   0xe   :  { %s189_s16 = smov [#allocation5]  }
   0xf   :  { %s39_s17 = sshll.u32 %s189_s16, 4  ;;  %s40_s17 = int_to_ptr.vmem [resolvable:$true] %s39_s17 }
  0x10   :  { %s148_s18 = scalar_lea.vmem %s40_s17, 256  ;;  %p153_p6 = scmp.lt.s32.totalorder %s40_s17, %s40_s17 }
  0x11   :  { %p149_p5 = scmp.ne.s32.totalorder %s40_s17, %s148_s18  ;;  %p154_p7 = scmp.lt.s32.totalorder %s148_s18, %s148_s18 }
  0x13   :  { %p155_p8 = por %p154_p7, %p153_p6 }
  0x15   :  { %p156_p9 = pnand %p155_p8, %p149_p5 }
  0x17   :  { %159 = shalt.err (!%p156_p9)
}
  0x18   :  { %45 = dma.hbm_to_vmem [thread:$0]  %s225_s1, 256, %s40_s17, [#allocation6], %s187_s12, %s187_s12, %s188_s13  }
  0x19   :  { %180 = dma.done.wait [#allocation3], 256  }
  0x1a   :  { %181 = vsyncadd [#allocation3], 4294967040 }
  0x1b   :  { %182 = dma.done.wait [#allocation6], 256  }
  0x1c   :  { %183 = vsyncadd [#allocation6], 4294967040  ;;  %v76_v0 = vld [vmem:[#allocation2] sm:$0xff]  ;;  %v78_v1 = vld [vmem:[#allocation5] sm:$0xff]  ;;  %s190_s0 = smov [#allocation7]  }
  0x1d   :  { %v77_v2 = vld [vmem:[#allocation2 + $0x8] sm:$0xff]  ;;  %v80_v3 = vsub.f32 %v76_v0, %v78_v1  ;;  %v79_v4 = vld [vmem:[#allocation5 + $0x8] sm:$0xff]  ;;  %s97_s21 = sshll.u32 %s190_s0, 4  ;;  %s98_s21 = int_to_ptr.vmem [resolvable:$true] %s97_s21 }
  0x1e   :  { %v81_v5 = vsub.f32 %v77_v2, %v79_v4  ;;  %s160_s22 = scalar_lea.vmem %s98_s21, 256  ;;  %p165_p11 = scmp.lt.s32.totalorder %s98_s21, %s98_s21 }
  0x1f   :  { %v86_v6 = vmul.f32 %v80_v3, %v80_v3  ;;  %p161_p10 = scmp.ne.s32.totalorder %s98_s21, %s160_s22  ;;  %p166_p12 = scmp.lt.s32.totalorder %s160_s22, %s160_s22 }
  0x20   :  { %v87_v7 = vmul.f32 %v81_v5, %v81_v5 }
  0x21   :  { %90 = vst [vmem:[#allocation7] sm:$0xff] %v86_v6  ;;  %p167_p13 = por %p166_p12, %p165_p11 }
  0x22   :  { %91 = vst [vmem:[#allocation7 + $0x8] sm:$0xff] %v87_v7 }
  0x23   :  { %p168_p0 = pnand %p167_p13, %p161_p10 }
  0x25   :  { %171 = shalt.err (!%p168_p0)
}
  0x26   :  { %103 = dma.vmem_to_hbm [thread:$0]  %s98_s21, 256, %s226_s2, [#allocation4], %s187_s12, %s187_s12, %s188_s13  }
  0x27   :  { %184 = dma.done.wait [#allocation4], 256  }
  0x28   :  { %185 = vsyncadd [#allocation4], 4294967040 }
  0x29   :  { %107 = vsyncpa [#allocation3], 1 }
  0x2a   :  { %108 = vsyncpa [#allocation6], 1 }
  0x2b   :  { %109 = vsyncpa [#allocation4], 1 }

</bundles_post_ra>
